<compile_context>
chip_gen: v7x
topology: tpu7x:2x2x1
jax: 0.10.0
libtpu: 0.0.40
codegen_flags: <defaults>
</compile_context>

<pallas_src>
import jax
import jax.numpy as jnp
from jax.experimental import pallas as pl
from jax.experimental.pallas import tpu as pltpu


# ----------------------------------------------------------------------------
# Pallas kernel: batched, fused Actor feature computation
# ----------------------------------------------------------------------------

def _round_up(x, m):
    return ((x + m - 1) // m) * m


def _pad_feature_dim(d):
    """Pad output feature dim to a lane-dense width; pick the column tile."""
    d_pad = _round_up(max(d, 128), 128)
    if d_pad <= 512:
        return d_pad, d_pad
    # Pad to a 256-multiple (v6e/v7x MXU-native) instead of a 512-multiple to
    # avoid up to ~70% dead columns for dims just over a tile.
    d_pad = _round_up(d_pad, 256)
    tn = 512 if d_pad % 512 == 0 else 256
    return d_pad, tn


def _actor_batched_kernel(x_ref, w_ref, b_ref, o_ref, acc_ref):
    """ft = tanh(x @ W_comb + b_comb), K-split with f32 VMEM accumulator.

    x_ref:   (TM, TK)  bf16   env feature rows for this (row, k) tile
    w_ref:   (TK, TN)  bf16   fused weight (W_att @ W_out), padded
    b_ref:   (1, TN)   f32    fused bias   (b_att @ W_out + b_out), padded
    o_ref:   (TM, TN)  bf16   per-timestep Actor features
    acc_ref: (TM, TN)  f32    accumulator scratch (resident across the K axis)
    """
    k = pl.program_id(2)

    @pl.when(k == 0)
    def _init():
        acc_ref[...] = jnp.zeros_like(acc_ref)

    acc_ref[...] += jnp.dot(x_ref[...], w_ref[...],
                            preferred_element_type=jnp.float32)

    @pl.when(k == pl.num_programs(2) - 1)
    def _finalize():
        o_ref[...] = jnp.tanh(acc_ref[...] + b_ref[...]).astype(o_ref.dtype)


def _actor_features_batched(x, w_bf16, b_f32, tn, *, max_block_rows=512):
    """Compute Actor features for ALL timesteps in a single pallas_call.

    x:      (T, in_dim) f32
    w_bf16: (in_pad, dim_pad) bf16 (zero-padded fused weight)
    b_f32:  (1, dim_pad) f32      (zero-padded fused bias)
    returns (t_pad, dim_pad) bf16  -- padded; callers slice valid rows/cols.
    """
    T, in_dim = x.shape
    in_pad, dim_pad = w_bf16.shape

    # ---- row tiling: bf16-friendly multiples of 16; minimize row padding ----
    if T <= max_block_rows:
        tm = _round_up(max(T, 16), 16)
    else:
        cands = [c for c in (128, 256, 512) if c <= max_block_rows] or [max_block_rows]
        tm = min(cands, key=lambda c: (_round_up(T, c) - T, -c))
    t_pad = _round_up(T, tm)

    # ---- column tiling sanity ----
    assert dim_pad % tn == 0 and tn % 128 == 0

    # v7x dual-TC: if both parallel axes collapse to one block, split rows
    # (only when tm is large enough not to starve the 256-wide MXU).
    if (t_pad // tm) == 1 and (dim_pad // tn) == 1 and tm >= 256:
        tm //= 2
        t_pad = _round_up(T, tm)

    # ---- K tiling: keep a single weight tile within a ~4 MiB budget so the
    #      double-buffered pipeline fits v7x's smaller scoped VMEM ----
    k_budget = 4 << 20
    tk = in_pad
    if tk * tn * 2 > k_budget:
        tk = 128
        for m in range(in_pad // 128, 0, -1):
            cand = m * 128
            if in_pad % cand == 0 and cand * tn * 2 <= k_budget:
                tk = cand
                break
    n_i, n_j, n_k = t_pad // tm, dim_pad // tn, in_pad // tk

    # ---- grid ordering: make the larger operand's block index vary slowest
    #      (weight stays resident per column tile when n_k == 1) ----
    x_bytes = t_pad * in_pad * 2
    w_bytes = in_pad * dim_pad * 2
    rows_outer_cost = x_bytes * (1 if n_k == 1 else n_j) + w_bytes * n_i
    cols_outer_cost = w_bytes * (1 if n_k == 1 else n_i) + x_bytes * n_j
    rows_outer = rows_outer_cost <= cols_outer_cost

    if rows_outer:
        grid = (n_i, n_j, n_k)
        x_map = lambda i, j, k: (i, k)
        w_map = lambda i, j, k: (k, j)
        b_map = lambda i, j, k: (0, j)
        o_map = lambda i, j, k: (i, j)
    else:
        grid = (n_j, n_i, n_k)
        x_map = lambda j, i, k: (i, k)
        w_map = lambda j, i, k: (k, j)
        b_map = lambda j, i, k: (0, j)
        o_map = lambda j, i, k: (i, j)

    # Zero-pad activations once; MXU operands are bf16, accumulation f32.
    x_bf = jnp.pad(x, ((0, t_pad - T), (0, in_pad - in_dim))).astype(jnp.bfloat16)

    # Explicit VMEM budget: 2x double-buffered x/w/b/out tiles + accumulator.
    vmem_need = (2 * tm * tk * 2 + 2 * tk * tn * 2 + 2 * 8 * tn * 4
                 + 2 * tm * tn * 2 + tm * tn * 4)
    vmem_limit = min(max(2 * vmem_need, 16 << 20), 64 << 20)

    # TODO(synk): if the streamed operand's DMA is still exposed on-profile,
    # bump its BlockSpec to pipeline_mode=pl.Buffered(3).
    out = pl.pallas_call(
        _actor_batched_kernel,
        out_shape=jax.ShapeDtypeStruct((t_pad, dim_pad), jnp.bfloat16),
        grid_spec=pltpu.PrefetchScalarGridSpec(
            num_scalar_prefetch=0,
            grid=grid,
            in_specs=[
                pl.BlockSpec((tm, tk), x_map),
                pl.BlockSpec((tk, tn), w_map),
                pl.BlockSpec((1, tn), b_map),
            ],
            out_specs=pl.BlockSpec((tm, tn), o_map),
            scratch_shapes=[pltpu.VMEM((tm, tn), jnp.float32)],
        ),
        compiler_params=pltpu.CompilerParams(
            dimension_semantics=("parallel", "parallel", "arbitrary"),
            vmem_limit_bytes=vmem_limit),
        cost_estimate=pl.CostEstimate(
            flops=2 * t_pad * in_pad * dim_pad,
            transcendentals=t_pad * dim_pad,
            bytes_accessed=(x_bf.size * 2 + w_bf16.size * 2
                            + b_f32.size * 4 + t_pad * dim_pad * 2)),
    )(x_bf, w_bf16, b_f32)

    return out  # (t_pad, dim_pad) bf16, stays on device; sliced lazily


# ----------------------------------------------------------------------------
# macarico-style modules (parity with the spec; hot path goes through Pallas)
# ----------------------------------------------------------------------------

class EWMA:
    """Exponentially weighted moving average (scalar baseline)."""

    def __init__(self, rate, initial_value=0.0):
        self.rate = rate
        self.value = initial_value

    def update(self, x):
        if self.value is None:
            self.value = x
        else:
            self.value += self.rate * (x - self.value)

    def __call__(self):
        return self.value


class TypeMemory:
    def __init__(self):
        self.param = jnp.zeros((1,), jnp.float32)


class LinearAttention:
    """A minimal attention module: projects env's current feature row."""

    actor_dependent = False

    def __init__(self, key, in_dim, att_dim):
        scale = 1.0 / jnp.sqrt(in_dim)
        self.w = jax.random.uniform(key, (in_dim, att_dim), jnp.float32,
                                    -scale, scale)
        self.b = jnp.zeros((1, att_dim), jnp.float32)
        self.att_dim = att_dim


class Actor:
    """JAX/Pallas port of macarico Actor with a concrete `_forward`.

    Features for ALL timesteps are computed in one fused, batched Pallas
    kernel on the first forward call (there is no timestep recurrence); the
    per-timestep cache is filled lazily by slicing the padded device array,
    preserving the original caching + assertion semantics.
    """

    OVERRIDE_FORWARD = False

    def __init__(self, n_actions, dim, attention, key):
        self._current_env = None
        self._features = None
        self._features_padded = None
        self.n_actions = n_actions
        self.dim = dim
        self.attention = list(attention)
        self._T = None
        self._last_t = 0
        for att in self.attention:
            if att.actor_dependent:
                att.set_actor(self)
        self._typememory = TypeMemory()  # parity only; unused in forward

        # Reference (un-fused) parameters.
        in_dim = self.attention[0].w.shape[0]
        self._w_att = jnp.concatenate([a.w for a in self.attention], axis=1)
        self._b_att = jnp.concatenate([a.b for a in self.attention], axis=1)
        concat_dim = self._w_att.shape[1]
        scale = 1.0 / jnp.sqrt(concat_dim)
        self._w_out = jax.random.uniform(key, (concat_dim, dim), jnp.float32,
                                         -scale, scale)
        self._b_out = jnp.zeros((1, dim), jnp.float32)

        # Algebraically fuse the two linears (no nonlinearity between them):
        #   tanh((x @ W_att + b_att) @ W_out + b_out) == tanh(x @ W_comb + b_comb)
        # NOTE: fusing + bf16 MXU operands is a deliberate precision trade
        # (fine for REINFORCE); accumulation/bias/tanh stay in f32.
        w_comb = self._w_att @ self._w_out                  # (in_dim, dim)
        b_comb = self._b_att @ self._w_out + self._b_out    # (1, dim)

        # Pad once to lane-dense shapes; store MXU operand in bf16.
        self._in_dim = in_dim
        self._in_pad = _round_up(max(in_dim, 128), 128)
        self._dim_pad, self._tn = _pad_feature_dim(dim)
        self._w_comb_bf16 = jnp.pad(
            w_comb, ((0, self._in_pad - in_dim), (0, self._dim_pad - dim))
        ).astype(jnp.bfloat16)
        self._b_comb_f32 = jnp.pad(b_comb, ((0, 0), (0, self._dim_pad - dim)))

    def reset(self):
        self._last_t = 0
        self._T = None
        self._features = None
        self._features_padded = None

    def features_all(self):
        """(T, dim) f32 view of all timestep features (one slice/upcast)."""
        assert self._features_padded is not None and self._T is not None
        return self._features_padded[:self._T, :self.dim].astype(jnp.float32)

    def forward(self, env):
        if self._features is None or self._T is None:
            self._T = env.horizon()
            self._last_t = 0
            # One batched kernel call computes every timestep's feature row;
            # the padded bf16 result stays on device and rows are sliced
            # lazily (identical semantics to lazy per-step computation since
            # ft only depends on x_t).
            X = env.feature_matrix()                      # (T, in_dim)
            self._features_padded = _actor_features_batched(
                X, self._w_comb_bf16, self._b_comb_f32, self._tn)
            self._features = [None] * self._T

        t = env.timestep()
        assert t <= self._last_t + 1, '%d <= %d+1' % (t, self._last_t)
        assert t >= self._last_t, '%d >= %d' % (t, self._last_t)
        self._last_t = t
        assert self._features is not None
        assert t >= 0
        assert t < self._T
        assert t < len(self._features)
        if self._features[t] is not None:
            return self._features[t]
        assert t == 0 or self._features[t - 1] is not None
        ft = self._features_padded[t:t + 1, :self.dim].astype(jnp.float32)
        assert ft.ndim == 2
        assert ft.shape[0] == 1
        assert ft.shape[1] == self.dim
        self._features[t] = ft
        return ft

    __call__ = forward


class StochasticPolicy:
    def stochastic(self, state):
        raise NotImplementedError('abstract')

    def sample(self, state):
        return self.stochastic(state)[0]


class SoftmaxPolicy(StochasticPolicy):
    """Softmax policy head on top of the Actor's Pallas-computed features.

    The head is batched: logits for ALL timesteps are computed with one small
    matmul per episode (instead of T per-step matmuls), removing per-step
    dispatch overhead which dominated wall clock at these sizes.
    """

    def __init__(self, actor, n_actions, key):
        self.actor = actor
        self.n_actions = n_actions
        scale = 1.0 / jnp.sqrt(actor.dim)
        self.w = jax.random.uniform(key, (actor.dim, n_actions), jnp.float32,
                                    -scale, scale)
        self.b = jnp.zeros((n_actions,), jnp.float32)
        self._rng = jax.random.PRNGKey(1234)
        self._logits_all = None
        self._feat_src = None

    def stochastic(self, env):
        self.actor(env)   # preserves per-timestep caching + assertions
        feats_padded = self.actor._features_padded
        if self._logits_all is None or self._feat_src is not feats_padded:
            F = self.actor.features_all()                 # (T, dim) f32
            self._logits_all = F @ self.w + self.b        # (T, n_actions)
            self._feat_src = feats_padded
        t = env.timestep()
        logits = self._logits_all[t]
        probs = jax.nn.softmax(logits, axis=-1)
        self._rng, sub = jax.random.split(self._rng)
        action = int(jax.random.categorical(sub, logits))
        return action, probs[action]


class Reinforce:
    """REINFORCE with a scalar baseline function (parity with the spec)."""

    def __init__(self, policy, baseline=None):
        assert isinstance(policy, StochasticPolicy)
        self.policy = policy
        self.baseline = EWMA(0.8) if baseline is None else baseline
        self.trajectory = []

    def get_objective(self, loss):
        if len(self.trajectory) == 0:
            return 0.0
        b = 0 if self.baseline is None else self.baseline()
        total_loss = sum(jnp.log(p_a) for p_a in self.trajectory) * (loss - b)
        if self.baseline is not None:
            self.baseline.update(loss)
        self.trajectory = []
        return total_loss

    def forward(self, state):
        action, p_action = self.policy.stochastic(state)
        self.trajectory.append(p_action)
        return action

    __call__ = forward


class ToyEnv:
    """Tiny environment: a fixed horizon and a feature row per timestep."""

    def __init__(self, features):
        self._features = features   # (T, in_dim)
        self._t = 0

    def horizon(self):
        return self._features.shape[0]

    def timestep(self):
        return self._t

    def step(self):
        self._t += 1

    def feature_matrix(self):
        return self._features

    def feature_row(self, t):
        return self._features[t:t + 1, :]


# ----------------------------------------------------------------------------
# Demo / correctness check
# ----------------------------------------------------------------------------

if __name__ == "__main__":
    key = jax.random.PRNGKey(0)
    k_env, k_att0, k_att1, k_actor, k_pi = jax.random.split(key, 5)

    n_actions = 4
    in_dim = 16
    att_dim = 16
    dim = 32
    T = 8

    attention = [LinearAttention(k_att0, in_dim, att_dim),
                 LinearAttention(k_att1, in_dim, att_dim)]
    actor = Actor(n_actions, dim, attention, k_actor)
    policy = SoftmaxPolicy(actor, n_actions, k_pi)
    learner = Reinforce(policy)

    env_feats = jax.random.normal(k_env, (T, in_dim), jnp.float32)
    env = ToyEnv(env_feats)

    actions = []
    for _ in range(T):
        a = learner(env)                     # policy.stochastic -> actor kernel
        ft = actor(env)
        ft_cached = actor(env)               # cached object at same timestep
        assert ft is ft_cached
        actions.append(a)
        env.step()

    objective = learner.get_objective(loss=1.0)
    objective = jax.block_until_ready(jnp.asarray(objective))

    # Verify the fused bf16 kernel against the un-fused f32 reference.
    feats = jax.block_until_ready(actor.features_all())   # (T, dim)
    ref = jnp.tanh((env_feats @ actor._w_att + actor._b_att)
                   @ actor._w_out + actor._b_out)
    assert feats.shape == (T, dim)
    assert bool(jnp.all(jnp.abs(feats - ref) < 3e-2)), "kernel mismatch vs ref"
    assert len(actions) == T

    print("KERNEL_OK")
</pallas_src>

<mosaic_0001>
module attributes {stable_mosaic.version = 11 : i64} {
  func.func @_actor_batched_kernel(%arg0: i32, %arg1: i32, %arg2: i32, %arg3: memref<16x128xbf16, #tpu.memory_space<vmem>>, %arg4: memref<128x128xbf16, #tpu.memory_space<vmem>>, %arg5: memref<1x128xf32, #tpu.memory_space<vmem>>, %arg6: memref<16x128xbf16, #tpu.memory_space<vmem>>, %arg7: memref<16x128xf32, #tpu.memory_space<vmem>>) attributes {dimension_semantics = [#tpu.dimension_semantics<parallel>, #tpu.dimension_semantics<parallel>, #tpu.dimension_semantics<arbitrary>], iteration_bounds = array<i64: 1, 1, 1>, scalar_prefetch = 0 : i64, scratch_operands = 1 : i64, tpu.core_type = #tpu.core_type<tc>, window_params = [{transform_indices = @transform_0, window_bounds = array<i64: 16, 128>}, {transform_indices = @transform_1, window_bounds = array<i64: 128, 128>}, {transform_indices = @transform_2, window_bounds = array<i64: 1, 128>}, {transform_indices = @transform_3, window_bounds = array<i64: 16, 128>}]} {
    %c0_i32 = arith.constant 0 : i32
    %0 = arith.cmpi eq, %arg2, %c0_i32 : i32
    %1 = arith.extui %0 : i1 to i32
    %c0_i32_0 = arith.constant 0 : i32
    %2 = arith.cmpi ne, %1, %c0_i32_0 : i32
    scf.if %2 {
      %cst_10 = arith.constant 0.000000e+00 : f32
      %12 = vector.broadcast %cst_10 : f32 to vector<16x128xf32>
      %c0_11 = arith.constant 0 : index
      %c0_12 = arith.constant 0 : index
      %13 = vector.load %arg7[%c0_11, %c0_12] : memref<16x128xf32, #tpu.memory_space<vmem>>, vector<16x128xf32>
      tpu.vector_store %arg7[%c0_11, %c0_12], %12 {strides = array<i32>} : memref<16x128xf32, #tpu.memory_space<vmem>>, vector<16x128xf32>,
    } else {
    }
    %c0 = arith.constant 0 : index
    %c0_1 = arith.constant 0 : index
    %3 = vector.load %arg7[%c0, %c0_1] : memref<16x128xf32, #tpu.memory_space<vmem>>, vector<16x128xf32>
    %c0_2 = arith.constant 0 : index
    %c0_3 = arith.constant 0 : index
    %4 = vector.load %arg3[%c0_2, %c0_3] : memref<16x128xbf16, #tpu.memory_space<vmem>>, vector<16x128xbf16>
    %c0_4 = arith.constant 0 : index
    %c0_5 = arith.constant 0 : index
    %5 = vector.load %arg4[%c0_4, %c0_5] : memref<128x128xbf16, #tpu.memory_space<vmem>>, vector<128x128xbf16>
    %cst = arith.constant dense<0.000000e+00> : vector<16x128xf32>
    %6 = tpu.matmul %4, %5, %cst {dimension_numbers = #tpu.dot_dimension_numbers<[1], [0], [0], [1], [0, 0, 1, 1], [], []>} : vector<16x128xbf16>, vector<128x128xbf16>, vector<16x128xf32> -> vector<16x128xf32>
    %7 = arith.addf %3, %6 : vector<16x128xf32>
    %c0_6 = arith.constant 0 : index
    %c0_7 = arith.constant 0 : index
    %8 = vector.load %arg7[%c0_6, %c0_7] : memref<16x128xf32, #tpu.memory_space<vmem>>, vector<16x128xf32>
    tpu.vector_store %arg7[%c0_6, %c0_7], %7 {strides = array<i32>} : memref<16x128xf32, #tpu.memory_space<vmem>>, vector<16x128xf32>,
    %c0_i32_8 = arith.constant 0 : i32
    %9 = arith.cmpi eq, %arg2, %c0_i32_8 : i32
    %10 = arith.extui %9 : i1 to i32
    %c0_i32_9 = arith.constant 0 : i32
    %11 = arith.cmpi ne, %10, %c0_i32_9 : i32
    scf.if %11 {
      %c0_10 = arith.constant 0 : index
      %c0_11 = arith.constant 0 : index
      %12 = vector.load %arg7[%c0_10, %c0_11] : memref<16x128xf32, #tpu.memory_space<vmem>>, vector<16x128xf32>
      %c0_12 = arith.constant 0 : index
      %c0_13 = arith.constant 0 : index
      %13 = vector.load %arg5[%c0_12, %c0_13] : memref<1x128xf32, #tpu.memory_space<vmem>>, vector<1x128xf32>
      %14 = vector.broadcast %13 : vector<1x128xf32> to vector<16x128xf32>
      %15 = arith.addf %12, %14 : vector<16x128xf32>
      %16 = math.tanh %15 : vector<16x128xf32>
      %17 = arith.truncf %16 : vector<16x128xf32> to vector<16x128xbf16>
      %c0_14 = arith.constant 0 : index
      %c0_15 = arith.constant 0 : index
      %18 = vector.load %arg6[%c0_14, %c0_15] : memref<16x128xbf16, #tpu.memory_space<vmem>>, vector<16x128xbf16>
      tpu.vector_store %arg6[%c0_14, %c0_15], %17 {strides = array<i32>} : memref<16x128xbf16, #tpu.memory_space<vmem>>, vector<16x128xbf16>,
    } else {
    }
    return
  }
  func.func @transform_0(%arg0: i32, %arg1: i32, %arg2: i32) -> (i32, i32) {
    %c0_i32 = arith.constant 0 : i32
    return %arg0, %arg2 : i32, i32
  }
  func.func @transform_1(%arg0: i32, %arg1: i32, %arg2: i32) -> (i32, i32) {
    %c0_i32 = arith.constant 0 : i32
    return %arg2, %arg1 : i32, i32
  }
  func.func @transform_2(%arg0: i32, %arg1: i32, %arg2: i32) -> (i32, i32) {
    %c0_i32 = arith.constant 0 : i32
    %c0_i32_0 = arith.constant 0 : i32
    return %c0_i32, %arg1 : i32, i32
  }
  func.func @transform_3(%arg0: i32, %arg1: i32, %arg2: i32) -> (i32, i32) {
    %c0_i32 = arith.constant 0 : i32
    return %arg0, %arg1 : i32, i32
  }
}

</mosaic_0001>

<bundles_post_ra>
// kernel: tpu_custom_call.1
= control target key start
LH: loop header
LB: loop body
LE: loop exit
PB: predicated region body
PF: predicated region fallthrough
CT: control target
= control target key end

     0   :  { %8 = vsyncpa [#allocation4], 0  ;;  %s428_s0 = inlined_call_operand.hbm [shape: bf16[16,128], index: 0, kind: input, shape index: {}]   ;;  %s429_s1 = inlined_call_operand.hbm [shape: bf16[128,128], index: 1, kind: input, shape index: {}]   ;;  %s430_s2 = inlined_call_operand.vmem [shape: f32[1,128], index: 2, kind: input, shape index: {}]   ;;  %s431_s3 = inlined_call_operand.hbm [shape: bf16[16,128], index: 3, kind: output, shape index: {}]  }
   0x1   :  { %9 = vsyncpa [#allocation7], 0 }
   0x2   :  { %10 = vsyncpa [#allocation5], 0  ;;  %s353_s12 = smov [#allocation3]   ;;  %s281_s16 = scalar_lea.hbm %s428_s0, 128 }
   0x3   :  { %s16_s13 = sshll.u32 %s353_s12, 4  ;;  %p282_p0 = scmp.ne.s32.totalorder %s428_s0, %s281_s16  ;;  %s17_s13 = int_to_ptr.vmem [resolvable:$true] %s16_s13 }
   0x4   :  { %p285_p1 = scmp.lt.u32.totalorder %s281_s16, %s428_s0 }
   0x6   :  { %p287_p2 = pnand %p285_p1, %p282_p0 }
   0x8   :  { %290 = shalt.err (!%p287_p2)
}
   0x9   :  { %s291_s21 = scalar_lea.vmem %s17_s13, 128  ;;  %p296_p4 = scmp.lt.s32.totalorder %s17_s13, %s17_s13 }
   0xa   :  { %p292_p3 = scmp.ne.s32.totalorder %s17_s13, %s291_s21  ;;  %p297_p5 = scmp.lt.s32.totalorder %s291_s21, %s291_s21 }
   0xc   :  { %p298_p6 = por %p297_p5, %p296_p4 }
   0xe   :  { %p299_p7 = pnand %p298_p6, %p292_p3 }
  0x10   :  { %302 = shalt.err (!%p299_p7)
}
  0x11   :  { %s354_s22 = smov 64   ;;  %s355_s23 = smov 4  }
  0x12   :  { %22 = dma.hbm_to_vmem [thread:$0]  %s428_s0, 128, %s17_s13, [#allocation4], %s354_s22, %s354_s22, %s355_s23  }
  0x13   :  { %s356_s26 = smov [#allocation6]   ;;  %s303_s30 = scalar_lea.hbm %s429_s1, 1024 }
  0x14   :  { %s28_s27 = sshll.u32 %s356_s26, 4  ;;  %p304_p8 = scmp.ne.s32.totalorder %s429_s1, %s303_s30  ;;  %s29_s27 = int_to_ptr.vmem [resolvable:$true] %s28_s27 }
  0x15   :  { %p307_p9 = scmp.lt.u32.totalorder %s303_s30, %s429_s1 }
  0x17   :  { %p309_p10 = pnand %p307_p9, %p304_p8 }
  0x19   :  { %312 = shalt.err (!%p309_p10)
}
  0x1a   :  { %s313_s8 = scalar_lea.vmem %s29_s27, 1024  ;;  %p318_p12 = scmp.lt.s32.totalorder %s29_s27, %s29_s27 }
  0x1b   :  { %p314_p11 = scmp.ne.s32.totalorder %s29_s27, %s313_s8  ;;  %p319_p13 = scmp.lt.s32.totalorder %s313_s8, %s313_s8 }
  0x1d   :  { %p320_p0 = por %p319_p13, %p318_p12 }
  0x1f   :  { %p321_p1 = pnand %p320_p0, %p314_p11 }
  0x21   :  { %324 = shalt.err (!%p321_p1)
}
  0x22   :  { %34 = dma.hbm_to_vmem [thread:$0]  %s429_s1, 1024, %s29_s27, [#allocation7], %s354_s22, %s354_s22, %s355_s23  }
  0x23   :  { %347 = dma.done.wait [#allocation4], 128  }
  0x24   :  { %348 = vsyncadd [#allocation4], 4294967168 }
  0x25   :  { %349 = dma.done.wait [#allocation7], 1024  }
  0x26   :  { %350 = vsyncadd [#allocation7], 4294966272  ;;  %v357_v0 = vmov 0.0   ;;  %vm358_vm0 = vmmov 0   ;;  %v268_v1 = vld [vmem:[#allocation6] sm:$0xff]   ;;  %v269_v2 = vld [vmem:[#allocation6 + $0x8] sm:$0xff]  }
  0x27   :  { %241 = vmatprep.subr.bf16.mxu0 %v357_v0  ;;  %257 = vmatprep.mubr.msk.bf16.mxu0 %vm358_vm0, %v357_v0  ;;  %v270_v3 = vld [vmem:[#allocation6 + $0x10] sm:$0xff]   ;;  %v271_v4 = vld [vmem:[#allocation6 + $0x18] sm:$0xff]   ;;  %v272_v5 = vld [vmem:[#allocation6 + $0x20] sm:$0xff]   ;;  %s359_s11 = smov [#allocation8]  }
  0x28   :  { %242 = vmatpush3.bf16.msra.mxu0 %v268_v1  ;;  %v273_v6 = vld [vmem:[#allocation6 + $0x28] sm:$0xff]   ;;  %v274_v7 = vld [vmem:[#allocation6 + $0x30] sm:$0xff]   ;;  %v275_v8 = vld [vmem:[#allocation6 + $0x38] sm:$0xff]   ;;  %s200_s12 = sshll.u32 %s359_s11, 4  ;;  %s201_s12 = int_to_ptr.vmem [resolvable:$true] %s200_s12 }
  0x29   :  { %243 = vmatprep.subr.bf16.mxu0 %v357_v0  ;;  %v276_v9 = vld [vmem:[#allocation3] sm:$0xff]   ;;  %s325_s13 = scalar_lea.vmem %s201_s12, 128  ;;  %p330_p3 = scmp.lt.s32.totalorder %s201_s12, %s201_s12 }
  0x2a   :  { %v222_v10 = vld [vmem:[%s430_s2] ss:$0 sm:$0xff]  ;;  %p326_p2 = scmp.ne.s32.totalorder %s201_s12, %s325_s13  ;;  %p331_p4 = scmp.lt.s32.totalorder %s325_s13, %s325_s13 }
  0x2c   :  { %244 = vmatpush3.bf16.msra.mxu0 %v269_v2  ;;  %p332_p5 = por %p331_p4, %p330_p3 }
  0x2d   :  { %245 = vmatprep.subr.bf16.mxu0 %v357_v0 }
  0x2e   :  { %p333_p6 = pnand %p332_p5, %p326_p2 }
  0x30   :  { %246 = vmatpush3.bf16.msra.mxu0 %v270_v3 }
  0x31   :  { %247 = vmatprep.subr.bf16.mxu0 %v357_v0 }
  0x34   :  { %248 = vmatpush3.bf16.msra.mxu0 %v271_v4 }
  0x35   :  { %249 = vmatprep.subr.bf16.mxu0 %v357_v0 }
  0x38   :  { %250 = vmatpush3.bf16.msra.mxu0 %v272_v5 }
  0x39   :  { %251 = vmatprep.subr.bf16.mxu0 %v357_v0 }
  0x3c   :  { %252 = vmatpush3.bf16.msra.mxu0 %v273_v6 }
  0x3d   :  { %253 = vmatprep.subr.bf16.mxu0 %v357_v0 }
  0x40   :  { %254 = vmatpush3.bf16.msra.mxu0 %v274_v7 }
  0x41   :  { %255 = vmatprep.subr.bf16.mxu0 %v357_v0 }
  0x44   :  { %256 = vmatpush3.bf16.msra.mxu0 %v275_v8 }
  0x47   :  { %258 = vmatmul.mubr.bf16.vlgmr.msra.gmra.mrb[0].mxu0 %v276_v9 }
 0x11a   :  { %v158_v11 = vpop.f32.mrb[0].mxu0 }
 0x11b   :  { %v181_v12 = vadd.f32 %v222_v10, %v158_v11  ;;  %v259_v13 = vpop.f32.mrb[1].mxu0 }
 0x11c   :  { %v161_v14 = vpop.f32.mrb[2].mxu0 }
 0x11d   :  { %v182_v15 = vadd.f32 %v222_v10, %v161_v14  ;;  %v260_v16 = vpop.f32.mrb[3].mxu0  ;;  %277 = vtanh.f32 %v181_v12 }
 0x11f   :  { %279 = vtanh.f32 %v182_v15 }
 0x127   :  { %v278_v17 = vpop.eup %277 }
 0x129   :  { %v280_v18 = vpop.eup %279 }
 0x12a   :  { %v230_v19 = vpack.c.bf16 %v280_v18, %v278_v17 }
 0x12c   :  { %231 = vst [vmem:[#allocation8] sm:$0xff] %v230_v19  }
 0x12d   :  { %336 = shalt.err (!%p333_p6)
}
 0x12e   :  { %s337_s15 = scalar_lea.hbm %s431_s3, 128 }
 0x12f   :  { %p338_p7 = scmp.ne.s32.totalorder %s431_s3, %s337_s15  ;;  %p341_p8 = scmp.lt.u32.totalorder %s337_s15, %s431_s3 }
 0x131   :  { %p343_p9 = pnand %p341_p8, %p338_p7 }
 0x133   :  { %346 = shalt.err (!%p343_p9)
}
 0x134   :  { %206 = dma.vmem_to_hbm [thread:$0]  %s201_s12, 128, %s431_s3, [#allocation5], %s354_s22, %s354_s22, %s355_s23  }
 0x135   :  { %351 = dma.done.wait [#allocation5], 128  }
 0x136   :  { %352 = vsyncadd [#allocation5], 4294967168 }
 0x137   :  { %210 = vsyncpa [#allocation4], 1 }
 0x138   :  { %211 = vsyncpa [#allocation7], 1 }
 0x139   :  { %212 = vsyncpa [#allocation5], 1 }

</bundles_post_ra>
